<compile_context>
chip_gen: v6e
topology: v6e:2x2x1
jax: 0.10.0
libtpu: 0.0.40
codegen_flags: <defaults>
</compile_context>

<pallas_src>
import jax
import jax.numpy as jnp
from jax.experimental import pallas as pl
from jax.experimental.pallas import tpu as pltpu

BN_EPS = 1e-5


def _round_up(x, m):
    return (x + m - 1) // m * m


def _device_kind():
    try:
        return jax.devices()[0].device_kind.lower()
    except Exception:
        return ""


def _lane_multiple():
    # v6e / v7x have 2x256x256 MXUs -> prefer 256-aligned K/N when dims allow;
    # v5e's 4x128x128 MXU is native at 128.
    kind = _device_kind()
    if "v6" in kind or "v7" in kind:
        return 256
    return 128


def _physical_vmem_bytes():
    try:
        cap = getattr(pltpu.get_tpu_info(), "vmem_capacity_bytes", None)
        if cap:
            return int(cap)
    except Exception:
        pass
    # v7x has 64 MiB VMEM per TensorCore; v5e/v6e have 128 MiB.
    if "v7" in _device_kind():
        return 64 * 1024 * 1024
    return 128 * 1024 * 1024


def _pad_dim(d, lane_mult):
    p = _round_up(d, 128)
    if lane_mult == 256 and p > 128:
        p = _round_up(d, 256)
    return p


# --------------------------------------------------------------------------------------
# Kernel
# --------------------------------------------------------------------------------------
def _mlp_kernel(x_ref,
                w1_ref, b1_ref,
                w2_ref, b2_ref,
                w3_ref, b3_ref,
                w4_ref, b4_ref,
                w5_ref, b5_ref,
                out_ref):
    # x_ref: (TB, Din_p) bf16 ; wN_ref: bf16 (in_p, out_p) ; bN_ref: f32 (1, out_p)
    def layer(h, w_ref, b_ref, relu):
        y = jnp.dot(h, w_ref[...], preferred_element_type=jnp.float32) + b_ref[...]
        if relu:
            # ReLU after the bf16 cast is bit-identical to relu-then-cast and halves
            # VPU op count / vreg pressure on bf16-VALU parts (v6e/v7x).
            return jnp.maximum(y.astype(jnp.bfloat16), 0)
        return y

    h = x_ref[...]
    h = layer(h, w1_ref, b1_ref, True)
    h = layer(h, w2_ref, b2_ref, True)
    h = layer(h, w3_ref, b3_ref, True)
    h = layer(h, w4_ref, b4_ref, True)
    out_ref[...] = layer(h, w5_ref, b5_ref, False).astype(out_ref.dtype)


# --------------------------------------------------------------------------------------
# Wrapper
# --------------------------------------------------------------------------------------
def prepare_mlp_params(params, lane_mult=None):
    """Pad + bf16-cast the weights once per weight update (hoisted out of the forward).

    params: list of 5 (W, b); W stored as (in_features, out_features), b as (out,).
    """
    if lane_mult is None:
        lane_mult = _lane_multiple()
    dims = [params[0][0].shape[0]] + [w.shape[1] for w, _ in params]
    dims_p = [_pad_dim(d, lane_mult) for d in dims]

    padded = []
    for li, (w, b) in enumerate(params):
        ip, op = dims_p[li], dims_p[li + 1]
        w_p = jnp.zeros((ip, op), jnp.bfloat16).at[:w.shape[0], :w.shape[1]].set(
            w.astype(jnp.bfloat16))
        b_p = jnp.zeros((1, op), jnp.float32).at[0, :b.shape[-1]].set(
            b.reshape(-1).astype(jnp.float32))
        padded.append((w_p, b_p))
    return {"padded": padded, "dims": dims, "dims_p": dims_p}


def _act_bytes(tb, dims_p):
    din_p, dout_p = dims_p[0], dims_p[-1]
    max_h = max(dims_p)
    # double-buffered x (bf16) / out (f32) tiles + in-kernel f32/bf16 intermediates
    # (~4 live max-width tiles); intermediates are NOT double-buffered.
    return tb * (2 * din_p * 2 + 2 * dout_p * 4 + 16 * max_h)


def _choose_tb(b8, dims_p, param_bytes, vmem_budget):
    candidates = [1024, 512, 256, 128, 64, 32, 16, 8]
    feasible = [tb for tb in candidates
                if param_bytes + _act_bytes(tb, dims_p) <= vmem_budget]
    tb_max = feasible[0]
    # Balance batch-padding waste against per-grid-step overhead (~0.35 us/step),
    # expressed here as ~32 "row-equivalents" per step.
    overhead_rows = 32
    best_tb, best_cost = None, None
    for tb in candidates:
        if tb > tb_max:
            continue
        steps = pl.cdiv(b8, tb)
        cost = steps * tb + steps * overhead_rows
        if best_cost is None or cost < best_cost:
            best_tb, best_cost = tb, cost
    return best_tb


def mlp_forward(x, prepared):
    """x: (B, input_dim) float. prepared = prepare_mlp_params(params)."""
    padded = prepared["padded"]
    dims, dims_p = prepared["dims"], prepared["dims_p"]
    B, input_dim = x.shape
    assert input_dim == dims[0]
    output_dim = dims[-1]
    din_p, dout_p = dims_p[0], dims_p[-1]

    # ---- Training-mode BatchNorm1d (affine identity) in f32 in the wrapper ----
    # Centering/scaling happens BEFORE the bf16 cast -> well-conditioned normalization.
    x = x.astype(jnp.float32)
    mean = jnp.mean(x, axis=0, keepdims=True)
    var = jnp.mean(jnp.square(x - mean), axis=0, keepdims=True)   # biased variance
    x_n = (x - mean) * jax.lax.rsqrt(var + BN_EPS)

    # ---- VMEM budget (hardware-aware, with headroom for Mosaic internal scratch) ----
    param_bytes = sum(dims_p[i] * dims_p[i + 1] * 2 + dims_p[i + 1] * 4 for i in range(5))
    vmem_budget = min(int(_physical_vmem_bytes() * 0.82), 112 * 1024 * 1024)

    if param_bytes + _act_bytes(8, dims_p) > vmem_budget:
        # TODO(synk): add a K/N-tiled fallback (extra grid axes + f32 accumulator) for
        # weights that do not fit VMEM-resident (hidden_dim >= ~2.7k on v7x, ~5k on v6e).
        raise ValueError("hidden_dim too large for the VMEM-resident weight plan")

    # ---- Adaptive batch tile: multiple of 8 sublanes, limits padding + step overhead ----
    b8 = _round_up(B, 8)
    TB = _choose_tb(b8, dims_p, param_bytes, vmem_budget)
    b_p = _round_up(b8, TB)

    x_p = jnp.zeros((b_p, din_p), jnp.bfloat16).at[:B, :input_dim].set(
        x_n.astype(jnp.bfloat16))

    flat = [x_p]
    in_specs = [pl.BlockSpec((TB, din_p), lambda i: (i, 0))]
    for li, (w_p, b_pd) in enumerate(padded):
        ip, op = dims_p[li], dims_p[li + 1]
        flat += [w_p, b_pd]
        # Constant index maps + single buffering: weights/biases stay VMEM-resident
        # across the batch grid and do not pay for a second pipeline buffer.
        in_specs += [
            pl.BlockSpec((ip, op), lambda i: (0, 0), pipeline_mode=pl.Buffered(1)),
            pl.BlockSpec((1, op), lambda i: (0, 0), pipeline_mode=pl.Buffered(1)),
        ]
    out_spec = pl.BlockSpec((TB, dout_p), lambda i: (i, 0))

    needed = param_bytes + _act_bytes(TB, dims_p) + 2 * 1024 * 1024
    vmem_limit = int(min(vmem_budget, max(16 * 1024 * 1024, needed)))

    out_p = pl.pallas_call(
        _mlp_kernel,
        out_shape=jax.ShapeDtypeStruct((b_p, dout_p), jnp.float32),
        grid_spec=pltpu.PrefetchScalarGridSpec(
            num_scalar_prefetch=0,
            grid=(b_p // TB,),
            in_specs=in_specs,
            out_specs=out_spec,
        ),
        compiler_params=pltpu.CompilerParams(
            dimension_semantics=("parallel",),
            vmem_limit_bytes=vmem_limit,
        ),
    )(*flat)

    return out_p[:B, :output_dim]


# --------------------------------------------------------------------------------------
# Init + references
# --------------------------------------------------------------------------------------
def init_params(key, input_dim, hidden_dim, output_dim):
    """Deterministic PyTorch-style Linear init (uniform +-1/sqrt(fan_in))."""
    dims = [(input_dim, hidden_dim),
            (hidden_dim, hidden_dim),
            (hidden_dim, hidden_dim),
            (hidden_dim, hidden_dim),
            (hidden_dim, output_dim)]
    params = []
    for fan_in, fan_out in dims:
        key, kw, kb = jax.random.split(key, 3)
        bound = 1.0 / (fan_in ** 0.5)
        # Stored as (in, out) == transpose of PyTorch's (out, in) weight.
        w = jax.random.uniform(kw, (fan_in, fan_out), jnp.float32, -bound, bound)
        b = jax.random.uniform(kb, (fan_out,), jnp.float32, -bound, bound)
        params.append((w, b))
    return params


def reference_forward_f32(x, params):
    """Pure-JAX f32 reference of the PyTorch module semantics."""
    mean = jnp.mean(x, axis=0, keepdims=True)
    var = jnp.mean((x - mean) ** 2, axis=0, keepdims=True)
    h = (x - mean) / jnp.sqrt(var + BN_EPS)
    for i, (w, b) in enumerate(params):
        h = h @ w + b
        if i < len(params) - 1:
            h = jnp.maximum(h, 0.0)
    return h


def reference_forward_bf16(x, params):
    """Reference mimicking the kernel's exact math (f32 BN, bf16 matmul operands)."""
    x = x.astype(jnp.float32)
    mean = jnp.mean(x, axis=0, keepdims=True)
    var = jnp.mean(jnp.square(x - mean), axis=0, keepdims=True)
    h = ((x - mean) * jax.lax.rsqrt(var + BN_EPS)).astype(jnp.bfloat16)
    for i, (w, b) in enumerate(params):
        y = jnp.dot(h, w.astype(jnp.bfloat16),
                    preferred_element_type=jnp.float32) + b.astype(jnp.float32)
        if i < len(params) - 1:
            h = jnp.maximum(y.astype(jnp.bfloat16), 0)
        else:
            h = y
    return h


if __name__ == "__main__":
    B, input_dim, hidden_dim, output_dim = 8, 16, 32, 8

    key = jax.random.PRNGKey(0)
    key, kx = jax.random.split(key)
    x = jax.random.normal(kx, (B, input_dim), jnp.float32)
    params = init_params(key, input_dim, hidden_dim, output_dim)

    prepared = prepare_mlp_params(params)   # hoisted: runs once per weight update
    out = mlp_forward(x, prepared)
    out = jax.block_until_ready(out)
    assert out.shape == (B, output_dim)

    # Tight check vs. a reference doing identical math (bf16 operands, f32 accumulation).
    ref_bf16 = reference_forward_bf16(x, params)
    assert jnp.allclose(out, ref_bf16, atol=2e-3, rtol=2e-3), "mismatch vs bf16-path reference"

    # Loose check vs. the pure-f32 PyTorch-semantics reference (bf16 rounding tolerance).
    ref_f32 = reference_forward_f32(x, params)
    assert jnp.allclose(out, ref_f32, atol=5e-2, rtol=5e-2), "mismatch vs f32 reference"

    print("KERNEL_OK")
</pallas_src>

<mosaic_0001>
module attributes {stable_mosaic.version = 11 : i64} {
  func.func @_mlp_kernel(%arg0: i32, %arg1: memref<8x128xbf16, #tpu.memory_space<vmem>>, %arg2: memref<128x128xbf16, #tpu.memory_space<vmem>>, %arg3: memref<1x128xf32, #tpu.memory_space<vmem>>, %arg4: memref<128x128xbf16, #tpu.memory_space<vmem>>, %arg5: memref<1x128xf32, #tpu.memory_space<vmem>>, %arg6: memref<128x128xbf16, #tpu.memory_space<vmem>>, %arg7: memref<1x128xf32, #tpu.memory_space<vmem>>, %arg8: memref<128x128xbf16, #tpu.memory_space<vmem>>, %arg9: memref<1x128xf32, #tpu.memory_space<vmem>>, %arg10: memref<128x128xbf16, #tpu.memory_space<vmem>>, %arg11: memref<1x128xf32, #tpu.memory_space<vmem>>, %arg12: memref<8x128xf32, #tpu.memory_space<vmem>>) attributes {dimension_semantics = [#tpu.dimension_semantics<parallel>], iteration_bounds = array<i64: 1>, scalar_prefetch = 0 : i64, scratch_operands = 0 : i64, tpu.core_type = #tpu.core_type<tc>, window_params = [{transform_indices = @transform_0, window_bounds = array<i64: 8, 128>}, {pipeline_mode = #tpu.pipeline_mode<synchronous>, transform_indices = @transform_1, window_bounds = array<i64: 128, 128>}, {pipeline_mode = #tpu.pipeline_mode<synchronous>, transform_indices = @transform_2, window_bounds = array<i64: 1, 128>}, {pipeline_mode = #tpu.pipeline_mode<synchronous>, transform_indices = @transform_3, window_bounds = array<i64: 128, 128>}, {pipeline_mode = #tpu.pipeline_mode<synchronous>, transform_indices = @transform_4, window_bounds = array<i64: 1, 128>}, {pipeline_mode = #tpu.pipeline_mode<synchronous>, transform_indices = @transform_5, window_bounds = array<i64: 128, 128>}, {pipeline_mode = #tpu.pipeline_mode<synchronous>, transform_indices = @transform_6, window_bounds = array<i64: 1, 128>}, {pipeline_mode = #tpu.pipeline_mode<synchronous>, transform_indices = @transform_7, window_bounds = array<i64: 128, 128>}, {pipeline_mode = #tpu.pipeline_mode<synchronous>, transform_indices = @transform_8, window_bounds = array<i64: 1, 128>}, {pipeline_mode = #tpu.pipeline_mode<synchronous>, transform_indices = @transform_9, window_bounds = array<i64: 128, 128>}, {pipeline_mode = #tpu.pipeline_mode<synchronous>, transform_indices = @transform_10, window_bounds = array<i64: 1, 128>}, {transform_indices = @transform_11, window_bounds = array<i64: 8, 128>}]} {
    %c0 = arith.constant 0 : index
    %c0_0 = arith.constant 0 : index
    %0 = vector.load %arg1[%c0, %c0_0] : memref<8x128xbf16, #tpu.memory_space<vmem>>, vector<8x128xbf16>
    %c0_1 = arith.constant 0 : index
    %c0_2 = arith.constant 0 : index
    %1 = vector.load %arg2[%c0_1, %c0_2] : memref<128x128xbf16, #tpu.memory_space<vmem>>, vector<128x128xbf16>
    %cst = arith.constant dense<0.000000e+00> : vector<8x128xf32>
    %2 = tpu.matmul %0, %1, %cst {dimension_numbers = #tpu.dot_dimension_numbers<[1], [0], [0], [1], [0, 0, 1, 1], [], []>} : vector<8x128xbf16>, vector<128x128xbf16>, vector<8x128xf32> -> vector<8x128xf32>
    %c0_3 = arith.constant 0 : index
    %c0_4 = arith.constant 0 : index
    %3 = vector.load %arg3[%c0_3, %c0_4] : memref<1x128xf32, #tpu.memory_space<vmem>>, vector<1x128xf32>
    %4 = vector.broadcast %3 : vector<1x128xf32> to vector<8x128xf32>
    %5 = arith.addf %2, %4 : vector<8x128xf32>
    %6 = arith.truncf %5 : vector<8x128xf32> to vector<8x128xbf16>
    %cst_5 = arith.constant 0.000000e+00 : bf16
    %7 = vector.broadcast %cst_5 : bf16 to vector<8x128xbf16>
    %8 = arith.maximumf %6, %7 : vector<8x128xbf16>
    %c0_6 = arith.constant 0 : index
    %c0_7 = arith.constant 0 : index
    %9 = vector.load %arg4[%c0_6, %c0_7] : memref<128x128xbf16, #tpu.memory_space<vmem>>, vector<128x128xbf16>
    %cst_8 = arith.constant dense<0.000000e+00> : vector<8x128xf32>
    %10 = tpu.matmul %8, %9, %cst_8 {dimension_numbers = #tpu.dot_dimension_numbers<[1], [0], [0], [1], [0, 0, 1, 1], [], []>} : vector<8x128xbf16>, vector<128x128xbf16>, vector<8x128xf32> -> vector<8x128xf32>
    %c0_9 = arith.constant 0 : index
    %c0_10 = arith.constant 0 : index
    %11 = vector.load %arg5[%c0_9, %c0_10] : memref<1x128xf32, #tpu.memory_space<vmem>>, vector<1x128xf32>
    %12 = vector.broadcast %11 : vector<1x128xf32> to vector<8x128xf32>
    %13 = arith.addf %10, %12 : vector<8x128xf32>
    %14 = arith.truncf %13 : vector<8x128xf32> to vector<8x128xbf16>
    %cst_11 = arith.constant 0.000000e+00 : bf16
    %15 = vector.broadcast %cst_11 : bf16 to vector<8x128xbf16>
    %16 = arith.maximumf %14, %15 : vector<8x128xbf16>
    %c0_12 = arith.constant 0 : index
    %c0_13 = arith.constant 0 : index
    %17 = vector.load %arg6[%c0_12, %c0_13] : memref<128x128xbf16, #tpu.memory_space<vmem>>, vector<128x128xbf16>
    %cst_14 = arith.constant dense<0.000000e+00> : vector<8x128xf32>
    %18 = tpu.matmul %16, %17, %cst_14 {dimension_numbers = #tpu.dot_dimension_numbers<[1], [0], [0], [1], [0, 0, 1, 1], [], []>} : vector<8x128xbf16>, vector<128x128xbf16>, vector<8x128xf32> -> vector<8x128xf32>
    %c0_15 = arith.constant 0 : index
    %c0_16 = arith.constant 0 : index
    %19 = vector.load %arg7[%c0_15, %c0_16] : memref<1x128xf32, #tpu.memory_space<vmem>>, vector<1x128xf32>
    %20 = vector.broadcast %19 : vector<1x128xf32> to vector<8x128xf32>
    %21 = arith.addf %18, %20 : vector<8x128xf32>
    %22 = arith.truncf %21 : vector<8x128xf32> to vector<8x128xbf16>
    %cst_17 = arith.constant 0.000000e+00 : bf16
    %23 = vector.broadcast %cst_17 : bf16 to vector<8x128xbf16>
    %24 = arith.maximumf %22, %23 : vector<8x128xbf16>
    %c0_18 = arith.constant 0 : index
    %c0_19 = arith.constant 0 : index
    %25 = vector.load %arg8[%c0_18, %c0_19] : memref<128x128xbf16, #tpu.memory_space<vmem>>, vector<128x128xbf16>
    %cst_20 = arith.constant dense<0.000000e+00> : vector<8x128xf32>
    %26 = tpu.matmul %24, %25, %cst_20 {dimension_numbers = #tpu.dot_dimension_numbers<[1], [0], [0], [1], [0, 0, 1, 1], [], []>} : vector<8x128xbf16>, vector<128x128xbf16>, vector<8x128xf32> -> vector<8x128xf32>
    %c0_21 = arith.constant 0 : index
    %c0_22 = arith.constant 0 : index
    %27 = vector.load %arg9[%c0_21, %c0_22] : memref<1x128xf32, #tpu.memory_space<vmem>>, vector<1x128xf32>
    %28 = vector.broadcast %27 : vector<1x128xf32> to vector<8x128xf32>
    %29 = arith.addf %26, %28 : vector<8x128xf32>
    %30 = arith.truncf %29 : vector<8x128xf32> to vector<8x128xbf16>
    %cst_23 = arith.constant 0.000000e+00 : bf16
    %31 = vector.broadcast %cst_23 : bf16 to vector<8x128xbf16>
    %32 = arith.maximumf %30, %31 : vector<8x128xbf16>
    %c0_24 = arith.constant 0 : index
    %c0_25 = arith.constant 0 : index
    %33 = vector.load %arg10[%c0_24, %c0_25] : memref<128x128xbf16, #tpu.memory_space<vmem>>, vector<128x128xbf16>
    %cst_26 = arith.constant dense<0.000000e+00> : vector<8x128xf32>
    %34 = tpu.matmul %32, %33, %cst_26 {dimension_numbers = #tpu.dot_dimension_numbers<[1], [0], [0], [1], [0, 0, 1, 1], [], []>} : vector<8x128xbf16>, vector<128x128xbf16>, vector<8x128xf32> -> vector<8x128xf32>
    %c0_27 = arith.constant 0 : index
    %c0_28 = arith.constant 0 : index
    %35 = vector.load %arg11[%c0_27, %c0_28] : memref<1x128xf32, #tpu.memory_space<vmem>>, vector<1x128xf32>
    %36 = vector.broadcast %35 : vector<1x128xf32> to vector<8x128xf32>
    %37 = arith.addf %34, %36 : vector<8x128xf32>
    %c0_29 = arith.constant 0 : index
    %c0_30 = arith.constant 0 : index
    %38 = vector.load %arg12[%c0_29, %c0_30] : memref<8x128xf32, #tpu.memory_space<vmem>>, vector<8x128xf32>
    tpu.vector_store %arg12[%c0_29, %c0_30], %37 {strides = array<i32>} : memref<8x128xf32, #tpu.memory_space<vmem>>, vector<8x128xf32>,
    return
  }
  func.func @transform_0(%arg0: i32) -> (i32, i32) {
    %c0_i32 = arith.constant 0 : i32
    %c0_i32_0 = arith.constant 0 : i32
    return %arg0, %c0_i32 : i32, i32
  }
  func.func @transform_1(%arg0: i32) -> (i32, i32) {
    %c0_i32 = arith.constant 0 : i32
    %c0_i32_0 = arith.constant 0 : i32
    %c0_i32_1 = arith.constant 0 : i32
    return %c0_i32, %c0_i32_0 : i32, i32
  }
  func.func @transform_2(%arg0: i32) -> (i32, i32) {
    %c0_i32 = arith.constant 0 : i32
    %c0_i32_0 = arith.constant 0 : i32
    %c0_i32_1 = arith.constant 0 : i32
    return %c0_i32, %c0_i32_0 : i32, i32
  }
  func.func @transform_3(%arg0: i32) -> (i32, i32) {
    %c0_i32 = arith.constant 0 : i32
    %c0_i32_0 = arith.constant 0 : i32
    %c0_i32_1 = arith.constant 0 : i32
    return %c0_i32, %c0_i32_0 : i32, i32
  }
  func.func @transform_4(%arg0: i32) -> (i32, i32) {
    %c0_i32 = arith.constant 0 : i32
    %c0_i32_0 = arith.constant 0 : i32
    %c0_i32_1 = arith.constant 0 : i32
    return %c0_i32, %c0_i32_0 : i32, i32
  }
  func.func @transform_5(%arg0: i32) -> (i32, i32) {
    %c0_i32 = arith.constant 0 : i32
    %c0_i32_0 = arith.constant 0 : i32
    %c0_i32_1 = arith.constant 0 : i32
    return %c0_i32, %c0_i32_0 : i32, i32
  }
  func.func @transform_6(%arg0: i32) -> (i32, i32) {
    %c0_i32 = arith.constant 0 : i32
    %c0_i32_0 = arith.constant 0 : i32
    %c0_i32_1 = arith.constant 0 : i32
    return %c0_i32, %c0_i32_0 : i32, i32
  }
  func.func @transform_7(%arg0: i32) -> (i32, i32) {
    %c0_i32 = arith.constant 0 : i32
    %c0_i32_0 = arith.constant 0 : i32
    %c0_i32_1 = arith.constant 0 : i32
    return %c0_i32, %c0_i32_0 : i32, i32
  }
  func.func @transform_8(%arg0: i32) -> (i32, i32) {
    %c0_i32 = arith.constant 0 : i32
    %c0_i32_0 = arith.constant 0 : i32
    %c0_i32_1 = arith.constant 0 : i32
    return %c0_i32, %c0_i32_0 : i32, i32
  }
  func.func @transform_9(%arg0: i32) -> (i32, i32) {
    %c0_i32 = arith.constant 0 : i32
    %c0_i32_0 = arith.constant 0 : i32
    %c0_i32_1 = arith.constant 0 : i32
    return %c0_i32, %c0_i32_0 : i32, i32
  }
  func.func @transform_10(%arg0: i32) -> (i32, i32) {
    %c0_i32 = arith.constant 0 : i32
    %c0_i32_0 = arith.constant 0 : i32
    %c0_i32_1 = arith.constant 0 : i32
    return %c0_i32, %c0_i32_0 : i32, i32
  }
  func.func @transform_11(%arg0: i32) -> (i32, i32) {
    %c0_i32 = arith.constant 0 : i32
    %c0_i32_0 = arith.constant 0 : i32
    return %arg0, %c0_i32 : i32, i32
  }
}

</mosaic_0001>

<bundles_post_ra>
// kernel: tpu_custom_call.1
= control target key start
LH: loop header
LB: loop body
LE: loop exit
PB: predicated region body
PF: predicated region fallthrough
CT: control target
= control target key end

     0   :  { %16 = vsyncpa [#allocation3], 0  ;;  %s1272_s0 = inlined_call_operand.hbm [shape: bf16[8,128], index: 0, kind: input, shape index: {}]   ;;  %s1273_s1 = inlined_call_operand.hbm [shape: bf16[128,128], index: 1, kind: input, shape index: {}]   ;;  %s1274_s2 = inlined_call_operand.vmem [shape: f32[1,128], index: 2, kind: input, shape index: {}]   ;;  %s1275_s3 = inlined_call_operand.hbm [shape: bf16[128,128], index: 3, kind: input, shape index: {}]   ;;  %s1276_s4 = inlined_call_operand.vmem [shape: f32[1,128], index: 4, kind: input, shape index: {}]   ;;  %s1277_s5 = inlined_call_operand.hbm [shape: bf16[128,128], index: 5, kind: input, shape index: {}]   ;;  %s1278_s6 = inlined_call_operand.vmem [shape: f32[1,128], index: 6, kind: input, shape index: {}]   ;;  %s1279_s7 = inlined_call_operand.hbm [shape: bf16[128,128], index: 7, kind: input, shape index: {}]   ;;  %s1280_s8 = inlined_call_operand.vmem [shape: f32[1,128], index: 8, kind: input, shape index: {}]   ;;  %s1281_s9 = inlined_call_operand.hbm [shape: bf16[128,128], index: 9, kind: input, shape index: {}]   ;;  %s1282_s10 = inlined_call_operand.vmem [shape: f32[1,128], index: 10, kind: input, shape index: {}]   ;;  %s1283_s11 = inlined_call_operand.hbm [shape: f32[8,128], index: 11, kind: output, shape index: {}]  }
   0x1   :  { %17 = vsyncpa [#allocation6], 0 }
   0x2   :  { %18 = vsyncpa [#allocation9], 0 }
   0x3   :  { %19 = vsyncpa [#allocation12], 0 }
   0x4   :  { %20 = vsyncpa [#allocation4], 0  ;;  %s1095_s17 = smov [#allocation5]  }
   0x5   :  { %s36_s18 = sshll.u32 %s1095_s17, 4  ;;  %s37_s18 = int_to_ptr.vmem [resolvable:$true] %s36_s18 }
   0x6   :  { %s953_s19 = scalar_lea.vmem %s37_s18, 1024  ;;  %p958_p1 = scmp.lt.s32.totalorder %s37_s18, %s37_s18 }
   0x7   :  { %p954_p0 = scmp.ne.s32.totalorder %s37_s18, %s953_s19  ;;  %p959_p2 = scmp.lt.s32.totalorder %s953_s19, %s953_s19 }
   0x9   :  { %p960_p3 = por %p959_p2, %p958_p1 }
   0xb   :  { %p961_p4 = pnand %p960_p3, %p954_p0 }
   0xd   :  { %964 = shalt.err (!%p961_p4)
}
   0xe   :  { %s1096_s20 = smov 64   ;;  %s1097_s21 = smov 4  }
   0xf   :  { %42 = dma.hbm_to_vmem [thread:$0]  %s1273_s1, 1024, %s37_s18, [#allocation6], %s1096_s20, %s1096_s20, %s1097_s21  }
  0x10   :  { %s1098_s24 = smov [#allocation8]   ;;  %s1099_s26 = smov [#allocation2]  }
  0x11   :  { %s64_s25 = sshll.u32 %s1098_s24, 4  ;;  %s27_s27 = sshll.u32 %s1099_s26, 4  ;;  %s65_s25 = int_to_ptr.vmem [resolvable:$true] %s64_s25  ;;  %s28_s27 = int_to_ptr.vmem [resolvable:$true] %s27_s27 }
  0x12   :  { %s973_s28 = scalar_lea.vmem %s65_s25, 1024  ;;  %p978_p6 = scmp.lt.s32.totalorder %s65_s25, %s65_s25 }
  0x13   :  { %p974_p5 = scmp.ne.s32.totalorder %s65_s25, %s973_s28  ;;  %p979_p7 = scmp.lt.s32.totalorder %s973_s28, %s973_s28 }
  0x15   :  { %p980_p8 = por %p979_p7, %p978_p6 }
  0x17   :  { %p981_p9 = pnand %p980_p8, %p974_p5 }
  0x19   :  { %984 = shalt.err (!%p981_p9)
}
  0x1a   :  { %70 = dma.hbm_to_vmem [thread:$0]  %s1277_s5, 1024, %s65_s25, [#allocation9], %s1096_s20, %s1096_s20, %s1097_s21  }
  0x1b   :  { %s993_s1 = scalar_lea.vmem %s28_s27, 64  ;;  %p998_p11 = scmp.lt.s32.totalorder %s28_s27, %s28_s27 }
  0x1c   :  { %p994_p10 = scmp.ne.s32.totalorder %s28_s27, %s993_s1  ;;  %p999_p12 = scmp.lt.s32.totalorder %s993_s1, %s993_s1 }
  0x1e   :  { %p1000_p13 = por %p999_p12, %p998_p11 }
  0x20   :  { %p1001_p0 = pnand %p1000_p13, %p994_p10 }
  0x22   :  { %1004 = shalt.err (!%p1001_p0)
}
  0x23   :  { %30 = dma.hbm_to_vmem [thread:$0]  %s1272_s0, 64, %s28_s27, [#allocation3]  }
  0x24   :  { %s1100_s14 = smov [#allocation7]   ;;  %s1101_s16 = smov [#allocation10]  }
  0x25   :  { %s50_s15 = sshll.u32 %s1100_s14, 4  ;;  %s78_s17 = sshll.u32 %s1101_s16, 4  ;;  %s51_s15 = int_to_ptr.vmem [resolvable:$true] %s50_s15  ;;  %s79_s17 = int_to_ptr.vmem [resolvable:$true] %s78_s17 }
  0x26   :  { %s1013_s18 = scalar_lea.vmem %s51_s15, 1024  ;;  %p1018_p2 = scmp.lt.s32.totalorder %s51_s15, %s51_s15 }
  0x27   :  { %p1014_p1 = scmp.ne.s32.totalorder %s51_s15, %s1013_s18  ;;  %p1019_p3 = scmp.lt.s32.totalorder %s1013_s18, %s1013_s18 }
  0x29   :  { %p1020_p4 = por %p1019_p3, %p1018_p2 }
  0x2b   :  { %p1021_p5 = pnand %p1020_p4, %p1014_p1 }
  0x2d   :  { %1024 = shalt.err (!%p1021_p5)
}
  0x2e   :  { %56 = dma.hbm_to_vmem [thread:$0]  %s1275_s3, 1024, %s51_s15, [#allocation6], %s1096_s20, %s1096_s20, %s1097_s21  }
  0x2f   :  { %s1033_s0 = scalar_lea.vmem %s79_s17, 1024  ;;  %p1038_p7 = scmp.lt.s32.totalorder %s79_s17, %s79_s17 }
  0x30   :  { %p1034_p6 = scmp.ne.s32.totalorder %s79_s17, %s1033_s0  ;;  %p1039_p8 = scmp.lt.s32.totalorder %s1033_s0, %s1033_s0 }
  0x32   :  { %p1040_p9 = por %p1039_p8, %p1038_p7 }
  0x34   :  { %p1041_p10 = pnand %p1040_p9, %p1034_p6 }
  0x36   :  { %1044 = shalt.err (!%p1041_p10)
}
  0x37   :  { %84 = dma.hbm_to_vmem [thread:$0]  %s1279_s7, 1024, %s79_s17, [#allocation9], %s1096_s20, %s1096_s20, %s1097_s21  }
  0x38   :  { %s1102_s24 = smov [#allocation11]  }
  0x39   :  { %s92_s25 = sshll.u32 %s1102_s24, 4  ;;  %s93_s25 = int_to_ptr.vmem [resolvable:$true] %s92_s25 }
  0x3a   :  { %s1053_s26 = scalar_lea.vmem %s93_s25, 1024  ;;  %p1058_p12 = scmp.lt.s32.totalorder %s93_s25, %s93_s25 }
  0x3b   :  { %p1054_p11 = scmp.ne.s32.totalorder %s93_s25, %s1053_s26  ;;  %p1059_p13 = scmp.lt.s32.totalorder %s1053_s26, %s1053_s26 }
  0x3d   :  { %p1060_p0 = por %p1059_p13, %p1058_p12 }
  0x3f   :  { %p1061_p1 = pnand %p1060_p0, %p1054_p11 }
  0x41   :  { %1064 = shalt.err (!%p1061_p1)
}
  0x42   :  { %98 = dma.hbm_to_vmem [thread:$0]  %s1281_s9, 1024, %s93_s25, [#allocation12], %s1096_s20, %s1096_s20, %s1097_s21  }
  0x43   :  { %1085 = dma.done.wait [#allocation3], 64  }
  0x44   :  { %1086 = vsyncadd [#allocation3], 4294967232 }
  0x45   :  { %1087 = dma.done.wait [#allocation6], 2048  }
  0x46   :  { %1088 = vsyncadd [#allocation6], 4294965248 }
  0x47   :  { %1089 = dma.done.wait [#allocation9], 2048  }
  0x48   :  { %1090 = vsyncadd [#allocation9], 4294965248 }
  0x49   :  { %1091 = dma.done.wait [#allocation12], 1024  }
  0x4a   :  { %1092 = vsyncadd [#allocation12], 4294966272  ;;  %v1103_v0 = vmov 0.0   ;;  %vm1104_vm0 = vmmov 0   ;;  %v905_v1 = vld [vmem:[#allocation5 + $0x38] sm:$0xff]   ;;  %v906_v2 = vld [vmem:[#allocation5 + $0x30] sm:$0xff]  }
  0x4b   :  { %793 = vmatprep.subr.bf16.mxu0 %v1103_v0  ;;  %809 = vmatprep.mubr.msk.bf16.mxu0 %vm1104_vm0, %v1103_v0  ;;  %v907_v3 = vld [vmem:[#allocation5 + $0x28] sm:$0xff]   ;;  %v913_v4 = vld [vmem:[#allocation7 + $0x38] sm:$0xff]   ;;  %v908_v5 = vld [vmem:[#allocation5 + $0x20] sm:$0xff]   ;;  %v1105_v30 = vmov 0   ;;  %s1106_s1 = smov [#allocation13]  }
  0x4c   :  { %813 = vmatprep.subr.bf16.mxu1 %v1103_v0  ;;  %829 = vmatprep.mubr.msk.bf16.mxu1 %vm1104_vm0, %v1103_v0  ;;  %v914_v6 = vld [vmem:[#allocation7 + $0x30] sm:$0xff]   ;;  %v909_v7 = vld [vmem:[#allocation5 + $0x18] sm:$0xff]   ;;  %v915_v8 = vld [vmem:[#allocation7 + $0x28] sm:$0xff]   ;;  %s691_s12 = sshll.u32 %s1106_s1, 4  ;;  %s692_s12 = int_to_ptr.vmem [resolvable:$true] %s691_s12 }
  0x4d   :  { %794 = vmatpush3.bf16.msra.mxu0 %v905_v1  ;;  %814 = vmatpush3.bf16.msra.mxu1 %v913_v4  ;;  %v910_v9 = vld [vmem:[#allocation5 + $0x10] sm:$0xff]   ;;  %v916_v10 = vld [vmem:[#allocation7 + $0x20] sm:$0xff]   ;;  %v911_v11 = vld [vmem:[#allocation5 + $0x8] sm:$0xff]   ;;  %p1070_p3 = scmp.lt.s32.totalorder %s692_s12, %s692_s12 }
  0x4e   :  { %795 = vmatprep.subr.bf16.mxu0 %v1103_v0  ;;  %815 = vmatprep.subr.bf16.mxu1 %v1103_v0  ;;  %v917_v12 = vld [vmem:[#allocation7 + $0x18] sm:$0xff]   ;;  %v912_v13 = vld [vmem:[#allocation5] sm:$0xff]   ;;  %v918_v14 = vld [vmem:[#allocation7 + $0x10] sm:$0xff]  }
  0x4f   :  { %v120_v15 = vld [vmem:[#allocation2] sm:$0xf]  ;;  %v919_v16 = vld [vmem:[#allocation7 + $0x8] sm:$0xff]   ;;  %v920_v17 = vld [vmem:[#allocation7] sm:$0xff]  }
  0x50   :  { %v921_v18 = vld [vmem:[#allocation8 + $0x38] sm:$0xff]   ;;  %v922_v19 = vld [vmem:[#allocation8 + $0x30] sm:$0xff]   ;;  %v923_v20 = vld [vmem:[#allocation8 + $0x28] sm:$0xff]  }
  0x51   :  { %796 = vmatpush3.bf16.msra.mxu0 %v906_v2  ;;  %816 = vmatpush3.bf16.msra.mxu1 %v914_v6  ;;  %v924_v21 = vld [vmem:[#allocation8 + $0x20] sm:$0xff]   ;;  %v925_v22 = vld [vmem:[#allocation8 + $0x18] sm:$0xff]   ;;  %v926_v23 = vld [vmem:[#allocation8 + $0x10] sm:$0xff]  }
  0x52   :  { %797 = vmatprep.subr.bf16.mxu0 %v1103_v0  ;;  %817 = vmatprep.subr.bf16.mxu1 %v1103_v0  ;;  %v703_v24 = vld [vmem:[%s1274_s2] ss:$0 sm:$0xff]  ;;  %v927_v33 = vld [vmem:[#allocation8 + $0x8] sm:$0xff]   ;;  %v928_v34 = vld [vmem:[#allocation8] sm:$0xff]  }
  0x53   :  { %v929_v35 = vld [vmem:[#allocation10 + $0x38] sm:$0xff]   ;;  %v930_v36 = vld [vmem:[#allocation10 + $0x30] sm:$0xff]   ;;  %v931_v37 = vld [vmem:[#allocation10 + $0x28] sm:$0xff]  }
  0x54   :  { %v932_v38 = vld [vmem:[#allocation10 + $0x20] sm:$0xff]   ;;  %v933_v39 = vld [vmem:[#allocation10 + $0x18] sm:$0xff]   ;;  %v934_v40 = vld [vmem:[#allocation10 + $0x10] sm:$0xff]  }
  0x55   :  { %798 = vmatpush3.bf16.msra.mxu0 %v907_v3  ;;  %818 = vmatpush3.bf16.msra.mxu1 %v915_v8  ;;  %v712_v41 = vld [vmem:[%s1276_s4] ss:$0 sm:$0xff]  ;;  %v935_v49 = vld [vmem:[#allocation10 + $0x8] sm:$0xff]   ;;  %v936_v50 = vld [vmem:[#allocation10] sm:$0xff]  }
  0x56   :  { %799 = vmatprep.subr.bf16.mxu0 %v1103_v0  ;;  %819 = vmatprep.subr.bf16.mxu1 %v1103_v0  ;;  %v937_v51 = vld [vmem:[#allocation11 + $0x38] sm:$0xff]   ;;  %v938_v52 = vld [vmem:[#allocation11 + $0x30] sm:$0xff]   ;;  %v939_v53 = vld [vmem:[#allocation11 + $0x28] sm:$0xff]  }
  0x57   :  { %v940_v54 = vld [vmem:[#allocation11 + $0x20] sm:$0xff]   ;;  %v941_v55 = vld [vmem:[#allocation11 + $0x18] sm:$0xff]   ;;  %v942_v56 = vld [vmem:[#allocation11 + $0x10] sm:$0xff]  }
  0x58   :  { %v721_v57 = vld [vmem:[%s1278_s6] ss:$0 sm:$0xff]  ;;  %v943_v2 = vld [vmem:[#allocation11 + $0x8] sm:$0xff]   ;;  %v944_v3 = vld [vmem:[#allocation11] sm:$0xff]  }
  0x59   :  { %800 = vmatpush3.bf16.msra.mxu0 %v908_v5  ;;  %820 = vmatpush3.bf16.msra.mxu1 %v916_v10  ;;  %v730_v4 = vld [vmem:[%s1280_s8] ss:$0 sm:$0xff]  ;;  %s1065_s8 = scalar_lea.vmem %s692_s12, 128 }
  0x5a   :  { %801 = vmatprep.subr.bf16.mxu0 %v1103_v0  ;;  %821 = vmatprep.subr.bf16.mxu1 %v1103_v0  ;;  %p1066_p2 = scmp.ne.s32.totalorder %s692_s12, %s1065_s8  ;;  %p1071_p4 = scmp.lt.s32.totalorder %s1065_s8, %s1065_s8 }
  0x5c   :  { %p1072_p5 = por %p1071_p4, %p1070_p3 }
  0x5d   :  { %802 = vmatpush3.bf16.msra.mxu0 %v909_v7  ;;  %822 = vmatpush3.bf16.msra.mxu1 %v917_v12  ;;  %v739_v12 = vld [vmem:[%s1282_s10] ss:$0 sm:$0xff] }
  0x5e   :  { %803 = vmatprep.subr.bf16.mxu0 %v1103_v0  ;;  %823 = vmatprep.subr.bf16.mxu1 %v1103_v0  ;;  %p1073_p6 = pnand %p1072_p5, %p1066_p2 }
  0x61   :  { %804 = vmatpush3.bf16.msra.mxu0 %v910_v9  ;;  %824 = vmatpush3.bf16.msra.mxu1 %v918_v14 }
  0x62   :  { %805 = vmatprep.subr.bf16.mxu0 %v1103_v0  ;;  %825 = vmatprep.subr.bf16.mxu1 %v1103_v0 }
  0x65   :  { %806 = vmatpush3.bf16.msra.mxu0 %v911_v11  ;;  %826 = vmatpush3.bf16.msra.mxu1 %v919_v16 }
  0x66   :  { %807 = vmatprep.subr.bf16.mxu0 %v1103_v0  ;;  %827 = vmatprep.subr.bf16.mxu1 %v1103_v0 }
  0x69   :  { %808 = vmatpush3.bf16.msra.mxu0 %v912_v13  ;;  %828 = vmatpush3.bf16.msra.mxu1 %v920_v17 }
  0x6a   :  { %833 = vmatprep.subr.bf16.mxu0 %v1103_v0  ;;  %853 = vmatprep.subr.bf16.mxu1 %v1103_v0 }
  0x6c   :  { %810 = vmatmul.mubr.bf16.vlgmr.msra.gmra.mxu0 %v120_v15 }
  0x6d   :  { %849 = vmatprep.mubr.msk.bf16.mxu0 %vm1104_vm0, %v1103_v0  ;;  %834 = vmatpush3.bf16.msra.mxu0 %v921_v18 }
  0x6e   :  { %835 = vmatprep.subr.bf16.mxu0 %v1103_v0 }
  0x71   :  { %836 = vmatpush3.bf16.msra.mxu0 %v922_v19 }
  0x72   :  { %837 = vmatprep.subr.bf16.mxu0 %v1103_v0 }
  0x75   :  { %838 = vmatpush3.bf16.msra.mxu0 %v923_v20 }
  0x76   :  { %839 = vmatprep.subr.bf16.mxu0 %v1103_v0 }
  0x79   :  { %840 = vmatpush3.bf16.msra.mxu0 %v924_v21 }
  0x7a   :  { %841 = vmatprep.subr.bf16.mxu0 %v1103_v0 }
  0x7d   :  { %842 = vmatpush3.bf16.msra.mxu0 %v925_v22 }
  0x7e   :  { %843 = vmatprep.subr.bf16.mxu0 %v1103_v0 }
  0x81   :  { %844 = vmatpush3.bf16.msra.mxu0 %v926_v23 }
  0x82   :  { %845 = vmatprep.subr.bf16.mxu0 %v1103_v0 }
  0x85   :  { %846 = vmatpush3.bf16.msra.mxu0 %v927_v33 }
  0x86   :  { %847 = vmatprep.subr.bf16.mxu0 %v1103_v0 }
  0x89   :  { %848 = vmatpush3.bf16.msra.mxu0 %v928_v34 }
  0x8a   :  { %873 = vmatprep.subr.bf16.mxu0 %v1103_v0 }
 0x12c   :  { %v226_v25 = vpop.f32.mrf.mxu0 }
 0x12d   :  { %v227_v26 = vadd.f32 %v703_v24, %v226_v25 }
 0x12e   :  { %v811_v27 = vpop.f32.mrf.mxu0 }
 0x12f   :  { %v232_v28 = vpack.c.bf16 %v227_v26, %v227_v26 }
 0x130   :  { %v229_v29 = vpop.f32.mrf.mxu0 }
 0x131   :  { %v233_v31 = vmax.bf16 %v1105_v30, %v232_v28 }
 0x132   :  { %v812_v32 = vpop.f32.mrf.mxu0 }
 0x133   :  { %830 = vmatmul.mubr.bf16.vlgmr.msra.gmra.mxu1 %v233_v31 }
 0x134   :  { %869 = vmatprep.mubr.msk.bf16.mxu1 %vm1104_vm0, %v1103_v0  ;;  %854 = vmatpush3.bf16.msra.mxu1 %v929_v35 }
 0x135   :  { %855 = vmatprep.subr.bf16.mxu1 %v1103_v0 }
 0x138   :  { %856 = vmatpush3.bf16.msra.mxu1 %v930_v36 }
 0x139   :  { %857 = vmatprep.subr.bf16.mxu1 %v1103_v0 }
 0x13c   :  { %858 = vmatpush3.bf16.msra.mxu1 %v931_v37 }
 0x13d   :  { %859 = vmatprep.subr.bf16.mxu1 %v1103_v0 }
 0x140   :  { %860 = vmatpush3.bf16.msra.mxu1 %v932_v38 }
 0x141   :  { %861 = vmatprep.subr.bf16.mxu1 %v1103_v0 }
 0x144   :  { %862 = vmatpush3.bf16.msra.mxu1 %v933_v39 }
 0x145   :  { %863 = vmatprep.subr.bf16.mxu1 %v1103_v0 }
 0x148   :  { %864 = vmatpush3.bf16.msra.mxu1 %v934_v40 }
 0x149   :  { %865 = vmatprep.subr.bf16.mxu1 %v1103_v0 }
 0x14c   :  { %866 = vmatpush3.bf16.msra.mxu1 %v935_v49 }
 0x14d   :  { %867 = vmatprep.subr.bf16.mxu1 %v1103_v0 }
 0x150   :  { %868 = vmatpush3.bf16.msra.mxu1 %v936_v50 }
 0x1f3   :  { %v339_v42 = vpop.f32.mrf.mxu1 }
 0x1f4   :  { %v340_v43 = vadd.f32 %v712_v41, %v339_v42 }
 0x1f5   :  { %v831_v44 = vpop.f32.mrf.mxu1 }
 0x1f6   :  { %v345_v45 = vpack.c.bf16 %v340_v43, %v340_v43 }
 0x1f7   :  { %v342_v46 = vpop.f32.mrf.mxu1 }
 0x1f8   :  { %v346_v47 = vmax.bf16 %v1105_v30, %v345_v45 }
 0x1f9   :  { %v832_v48 = vpop.f32.mrf.mxu1 }
 0x1fa   :  { %850 = vmatmul.mubr.bf16.vlgmr.msra.gmra.mxu0 %v346_v47 }
 0x1fb   :  { %889 = vmatprep.mubr.msk.bf16.mxu0 %vm1104_vm0, %v1103_v0  ;;  %874 = vmatpush3.bf16.msra.mxu0 %v937_v51 }
 0x1fc   :  { %875 = vmatprep.subr.bf16.mxu0 %v1103_v0 }
 0x1ff   :  { %876 = vmatpush3.bf16.msra.mxu0 %v938_v52 }
 0x200   :  { %877 = vmatprep.subr.bf16.mxu0 %v1103_v0 }
 0x203   :  { %878 = vmatpush3.bf16.msra.mxu0 %v939_v53 }
 0x204   :  { %879 = vmatprep.subr.bf16.mxu0 %v1103_v0 }
 0x207   :  { %880 = vmatpush3.bf16.msra.mxu0 %v940_v54 }
 0x208   :  { %881 = vmatprep.subr.bf16.mxu0 %v1103_v0 }
 0x20b   :  { %882 = vmatpush3.bf16.msra.mxu0 %v941_v55 }
 0x20c   :  { %883 = vmatprep.subr.bf16.mxu0 %v1103_v0 }
 0x20f   :  { %884 = vmatpush3.bf16.msra.mxu0 %v942_v56 }
 0x210   :  { %885 = vmatprep.subr.bf16.mxu0 %v1103_v0 }
 0x213   :  { %886 = vmatpush3.bf16.msra.mxu0 %v943_v2 }
 0x214   :  { %887 = vmatprep.subr.bf16.mxu0 %v1103_v0 }
 0x217   :  { %888 = vmatpush3.bf16.msra.mxu0 %v944_v3 }
 0x2ba   :  { %v452_v58 = vpop.f32.mrf.mxu0 }
 0x2bb   :  { %v453_v59 = vadd.f32 %v721_v57, %v452_v58 }
 0x2bc   :  { %v851_v60 = vpop.f32.mrf.mxu0 }
 0x2bd   :  { %v458_v61 = vpack.c.bf16 %v453_v59, %v453_v59 }
 0x2be   :  { %v455_v62 = vpop.f32.mrf.mxu0 }
 0x2bf   :  { %v459_v63 = vmax.bf16 %v1105_v30, %v458_v61 }
 0x2c0   :  { %v852_v1 = vpop.f32.mrf.mxu0 }
 0x2c1   :  { %870 = vmatmul.mubr.bf16.vlgmr.msra.gmra.mxu1 %v459_v63 }
 0x381   :  { %v565_v5 = vpop.f32.mrf.mxu1 }
 0x382   :  { %v566_v6 = vadd.f32 %v730_v4, %v565_v5 }
 0x383   :  { %v871_v7 = vpop.f32.mrf.mxu1 }
 0x384   :  { %v571_v8 = vpack.c.bf16 %v566_v6, %v566_v6 }
 0x385   :  { %v568_v9 = vpop.f32.mrf.mxu1 }
 0x386   :  { %v572_v10 = vmax.bf16 %v1105_v30, %v571_v8 }
 0x387   :  { %v872_v11 = vpop.f32.mrf.mxu1 }
 0x388   :  { %890 = vmatmul.mubr.bf16.vlgmr.msra.gmra.mxu0 %v572_v10 }
 0x448   :  { %v678_v0 = vpop.f32.mrf.mxu0 }
 0x449   :  { %v679_v13 = vadd.f32 %v739_v12, %v678_v0 }
 0x44a   :  { %v891_v14 = vpop.f32.mrf.mxu0 }
 0x44b   :  { %684 = vst [vmem:[#allocation13] sm:$0xff] %v679_v13 }
 0x44c   :  { %v681_v15 = vpop.f32.mrf.mxu0 }
 0x44d   :  { %1076 = shalt.err (!%p1073_p6)
}
 0x44e   :  { %694 = dma.vmem_to_hbm [thread:$0]  %s692_s12, 128, %s1283_s11, [#allocation4]   ;;  %v892_v16 = vpop.f32.mrf.mxu0 }
 0x44f   :  { %1093 = dma.done.wait [#allocation4], 128  }
 0x450   :  { %1094 = vsyncadd [#allocation4], 4294967168 }
 0x451   :  { %698 = vsyncpa [#allocation3], 1 }
 0x452   :  { %699 = vsyncpa [#allocation6], 1 }
 0x453   :  { %700 = vsyncpa [#allocation9], 1 }
 0x454   :  { %701 = vsyncpa [#allocation12], 1 }
 0x455   :  { %702 = vsyncpa [#allocation4], 1 }

</bundles_post_ra>
